<compile_context>
chip_gen: v5e
topology: v5e:2x2
jax: 0.10.0
libtpu: 0.0.40
codegen_flags: <defaults>
</compile_context>

<pallas_src>
import functools
import math

import jax
import jax.numpy as jnp
from jax.experimental import pallas as pl
from jax.experimental.pallas import tpu as pltpu


def _round_up(n: int, m: int) -> int:
    return ((n + m - 1) // m) * m


def _mlp_kernel(x_ref, *refs):
    """Kernel taking (x_ref, w0_ref, ..., w{L-1}_ref, out_ref) on the packed layout."""
    out_ref = refs[-1]
    w_refs = refs[:-1]
    compute_dtype = x_ref.dtype
    h = x_ref[...]                           # (TBP, pack*x_dim), compute dtype
    n = len(w_refs)
    y = None
    for i, w_ref in enumerate(w_refs):
        # Full-width MXU matmul with f32 accumulation; operands stay in compute dtype.
        y = jnp.dot(h, w_ref[...], preferred_element_type=jnp.float32)
        if i < n - 1:
            # f32 ReLU on the VPU (v5e has no bf16 VALU path), back to compute dtype for the MXU.
            h = jnp.maximum(y, 0.0).astype(compute_dtype)
    # Packed layout == output layout: cast and store directly (128-lane-dense, no reshape).
    out_ref[...] = y.astype(out_ref.dtype)


def prepare_params(weights, x_dim, compute_dtype=jnp.bfloat16,
                   max_packed_weight_bytes=8 * 1024 * 1024):
    """One-time prep (hoisted out of the hot path).

    Transposes PyTorch [out, in] weights to [in, out], then (when 128 % x_dim == 0)
    builds block-diagonal packed weights [pack*in, pack*out] so `pack` samples
    share one 128-lane row.  Falls back to pack=1 if packing would blow up the
    resident-weight footprint.  Returns (params, pack).
    """
    wt = [jnp.asarray(w).T.astype(jnp.float32) for w in weights]   # [in, out], f32 staging

    pack = (128 // x_dim) if (x_dim < 128 and 128 % x_dim == 0) else 1
    if pack > 1:
        itemsize = jnp.dtype(compute_dtype).itemsize
        packed_bytes = sum(int(w.shape[0]) * int(w.shape[1]) * pack * pack * itemsize
                           for w in wt)
        if packed_bytes > max_packed_weight_bytes:
            pack = 1

    if pack > 1:
        eye = jnp.eye(pack, dtype=jnp.float32)
        wt = [jnp.kron(eye, w) for w in wt]   # blockdiag(pack copies of w)

    params = [w.astype(compute_dtype) for w in wt]
    return params, pack


def tab_transform_net_forward(x, params, pack=1, *, tile_batch=4096):
    """Forward pass.

    x:      [B, x_dim]
    params: list of (possibly block-diagonal packed) weights [pack*in, pack*out]
            produced by prepare_params().
    pack:   row-packing factor returned by prepare_params().
    """
    B, x_dim = x.shape
    compute_dtype = params[0].dtype
    out_dtype = x.dtype
    lane_in = pack * x_dim
    lane_out = int(params[-1].shape[1])
    assert int(params[0].shape[0]) == lane_in, "first layer in_dim must be pack*x_dim"
    assert lane_out == lane_in, "last layer must map back to x_dim (packed)"

    # Batch tile alignment: 8 packed-row sublanes (16 for 16-bit sublane packing) x pack rows.
    sub = 16 if jnp.dtype(compute_dtype).itemsize < 4 else 8
    align = sub * pack

    B_align = _round_up(B, align)
    TB = min(_round_up(max(int(tile_batch), 1), align), B_align)
    # v7x: prefer >= 2 balanced tiles so the "parallel" grid axis uses both TensorCores.
    if TB >= B_align and B_align >= 2 * align:
        TB = _round_up((B_align + 1) // 2, align)
    num_tiles = pl.cdiv(B_align, TB)
    B_pad = num_tiles * TB
    TBP = TB // pack                      # packed rows per tile

    # Pad batch with zeros (bias-free net: zero rows stay zero, sliced off below).
    x_c = x.astype(compute_dtype)
    if B_pad != B:
        x_c = jnp.pad(x_c, ((0, B_pad - B), (0, 0)))
    # Free row-major reshape into the 128-lane-dense packed slab.
    x_packed = x_c.reshape(B_pad // pack, lane_in)

    in_specs = [pl.BlockSpec((TBP, lane_in), lambda i: (i, 0))]
    in_specs += [pl.BlockSpec(w.shape, lambda i: (0, 0)) for w in params]  # resident weights
    out_specs = pl.BlockSpec((TBP, lane_out), lambda i: (i, 0))
    out_shape = jax.ShapeDtypeStruct((B_pad // pack, lane_out), out_dtype)

    # VMEM budget: double-buffered x/out tiles + resident packed weights + f32 intermediates.
    itemsize = jnp.dtype(compute_dtype).itemsize
    x_blk_bytes = TBP * lane_in * itemsize
    out_blk_bytes = TBP * lane_out * jnp.dtype(out_dtype).itemsize
    w_bytes = sum(int(w.size) * itemsize for w in params)
    h_max = max(int(w.shape[1]) for w in params)
    inter_bytes = TBP * h_max * 4
    est = 2 * (x_blk_bytes + out_blk_bytes) + w_bytes + 2 * inter_bytes
    # Generation-aware cap (128 MiB VMEM on v5e/v6e, 64 MiB per TC on v7x); safe fallback.
    try:
        info = pltpu.get_tpu_info()
        vmem_cap = int(getattr(info, "vmem_capacity_bytes", 64 * 1024 * 1024))
    except Exception:
        vmem_cap = 64 * 1024 * 1024
    vmem_limit = int(min(max(4 * est, 32 * 1024 * 1024), (3 * vmem_cap) // 4))

    # Advisory cost estimate so XLA overlaps this tiny custom call with neighbors.
    flops = 2 * (B_pad // pack) * sum(int(w.shape[0]) * int(w.shape[1]) for w in params)
    bytes_accessed = (B_pad * x_dim * (itemsize + jnp.dtype(out_dtype).itemsize)) + w_bytes
    cost = pl.CostEstimate(flops=flops, transcendentals=0, bytes_accessed=bytes_accessed)

    out_packed = pl.pallas_call(
        _mlp_kernel,
        out_shape=out_shape,
        grid=(num_tiles,),
        in_specs=in_specs,
        out_specs=out_specs,
        compiler_params=pltpu.CompilerParams(
            dimension_semantics=("parallel",),   # shard batch tiles across TCs on v7x
            vmem_limit_bytes=vmem_limit,
        ),
        cost_estimate=cost,
    )(x_packed, *params)

    # Row-major view back to [B_pad, x_dim], drop padding.
    return out_packed.reshape(B_pad, x_dim)[:B]


def init_weights(key, x_dim, h_dim, num_layers, dtype=jnp.float32):
    """Deterministic init mirroring nn.Linear(bias=False): W_i is [out, in]."""
    dims_in = [x_dim] + [h_dim] * (num_layers - 1)
    dims_out = [h_dim] * (num_layers - 1) + [x_dim]
    weights = []
    for din, dout in zip(dims_in, dims_out):
        key, sub = jax.random.split(key)
        bound = 1.0 / math.sqrt(float(din))
        w = jax.random.uniform(sub, (dout, din), dtype=dtype,
                               minval=-bound, maxval=bound)
        weights.append(w)
    return weights


def reference_forward(x, weights):
    """Pure-JAX f32 reference of the PyTorch forward."""
    h = x.astype(jnp.float32)
    for i, w in enumerate(weights):
        h = h @ w.astype(jnp.float32).T
        if i < len(weights) - 1:
            h = jnp.maximum(h, 0.0)
    return h


if __name__ == "__main__":
    key = jax.random.PRNGKey(0)
    x_dim, h_dim, num_layers = 16, 32, 3

    key, kw = jax.random.split(key)
    weights = init_weights(kw, x_dim, h_dim, num_layers)

    # --- Test 1: f32 compute path, tight tolerance (exactness of kernel + packing logic) ---
    batch = 8
    key, kx = jax.random.split(key)
    x = jax.random.normal(kx, (batch, x_dim), dtype=jnp.float32)

    params_f32, pack_f32 = prepare_params(weights, x_dim, compute_dtype=jnp.float32)
    out_f32 = jax.block_until_ready(tab_transform_net_forward(x, params_f32, pack_f32))
    ref = reference_forward(x, weights)
    assert out_f32.shape == (batch, x_dim), out_f32.shape
    assert jnp.allclose(out_f32, ref, atol=1e-5, rtol=1e-5), "f32 mismatch vs reference"

    # --- Test 2: bf16 compute path + multi-tile batch grid (perf configuration) ---
    batch2 = 200  # forces padding and 2 grid tiles at tile_batch=64 (align=128)
    key, kx2 = jax.random.split(key)
    x2 = jax.random.normal(kx2, (batch2, x_dim), dtype=jnp.float32)

    params_bf16, pack_bf16 = prepare_params(weights, x_dim, compute_dtype=jnp.bfloat16)
    out_bf16 = jax.block_until_ready(
        tab_transform_net_forward(x2.astype(jnp.bfloat16), params_bf16, pack_bf16,
                                  tile_batch=64))
    ref2 = reference_forward(x2, weights)
    assert out_bf16.shape == (batch2, x_dim), out_bf16.shape
    assert jnp.allclose(out_bf16.astype(jnp.float32), ref2, atol=6e-2, rtol=6e-2), \
        "bf16 mismatch vs reference"

    print("KERNEL_OK")
</pallas_src>

<mosaic_0001>
module attributes {stable_mosaic.version = 11 : i64} {
  func.func @_mlp_kernel(%arg0: i32, %arg1: memref<8x128xf32, #tpu.memory_space<vmem>>, %arg2: memref<128x256xf32, #tpu.memory_space<vmem>>, %arg3: memref<256x256xf32, #tpu.memory_space<vmem>>, %arg4: memref<256x128xf32, #tpu.memory_space<vmem>>, %arg5: memref<8x128xf32, #tpu.memory_space<vmem>>) attributes {dimension_semantics = [#tpu.dimension_semantics<parallel>], iteration_bounds = array<i64: 1>, scalar_prefetch = 0 : i64, scratch_operands = 0 : i64, tpu.core_type = #tpu.core_type<tc>, window_params = [{transform_indices = @transform_0, window_bounds = array<i64: 8, 128>}, {pipeline_mode = #tpu.pipeline_mode<synchronous>, transform_indices = @transform_1, window_bounds = array<i64: 128, 256>}, {pipeline_mode = #tpu.pipeline_mode<synchronous>, transform_indices = @transform_2, window_bounds = array<i64: 256, 256>}, {pipeline_mode = #tpu.pipeline_mode<synchronous>, transform_indices = @transform_3, window_bounds = array<i64: 256, 128>}, {transform_indices = @transform_4, window_bounds = array<i64: 8, 128>}]} {
    %c0 = arith.constant 0 : index
    %c0_0 = arith.constant 0 : index
    %0 = vector.load %arg1[%c0, %c0_0] : memref<8x128xf32, #tpu.memory_space<vmem>>, vector<8x128xf32>
    %c0_1 = arith.constant 0 : index
    %c0_2 = arith.constant 0 : index
    %1 = vector.load %arg2[%c0_1, %c0_2] : memref<128x256xf32, #tpu.memory_space<vmem>>, vector<128x256xf32>
    %cst = arith.constant dense<0.000000e+00> : vector<8x256xf32>
    %2 = tpu.matmul %0, %1, %cst {dimension_numbers = #tpu.dot_dimension_numbers<[1], [0], [0], [1], [0, 0, 1, 1], [], []>} : vector<8x128xf32>, vector<128x256xf32>, vector<8x256xf32> -> vector<8x256xf32>
    %cst_3 = arith.constant 0.000000e+00 : f32
    %3 = vector.broadcast %cst_3 : f32 to vector<8x256xf32>
    %4 = arith.maximumf %2, %3 : vector<8x256xf32>
    %c0_4 = arith.constant 0 : index
    %c0_5 = arith.constant 0 : index
    %5 = vector.load %arg3[%c0_4, %c0_5] : memref<256x256xf32, #tpu.memory_space<vmem>>, vector<256x256xf32>
    %cst_6 = arith.constant dense<0.000000e+00> : vector<8x256xf32>
    %6 = tpu.matmul %4, %5, %cst_6 {dimension_numbers = #tpu.dot_dimension_numbers<[1], [0], [0], [1], [0, 0, 1, 1], [], []>} : vector<8x256xf32>, vector<256x256xf32>, vector<8x256xf32> -> vector<8x256xf32>
    %cst_7 = arith.constant 0.000000e+00 : f32
    %7 = vector.broadcast %cst_7 : f32 to vector<8x256xf32>
    %8 = arith.maximumf %6, %7 : vector<8x256xf32>
    %c0_8 = arith.constant 0 : index
    %c0_9 = arith.constant 0 : index
    %9 = vector.load %arg4[%c0_8, %c0_9] : memref<256x128xf32, #tpu.memory_space<vmem>>, vector<256x128xf32>
    %cst_10 = arith.constant dense<0.000000e+00> : vector<8x128xf32>
    %10 = tpu.matmul %8, %9, %cst_10 {dimension_numbers = #tpu.dot_dimension_numbers<[1], [0], [0], [1], [0, 0, 1, 1], [], []>} : vector<8x256xf32>, vector<256x128xf32>, vector<8x128xf32> -> vector<8x128xf32>
    %c0_11 = arith.constant 0 : index
    %c0_12 = arith.constant 0 : index
    %11 = vector.load %arg5[%c0_11, %c0_12] : memref<8x128xf32, #tpu.memory_space<vmem>>, vector<8x128xf32>
    tpu.vector_store %arg5[%c0_11, %c0_12], %10 {strides = array<i32>} : memref<8x128xf32, #tpu.memory_space<vmem>>, vector<8x128xf32>,
    return
  }
  func.func @transform_0(%arg0: i32) -> (i32, i32) {
    %c0_i32 = arith.constant 0 : i32
    %c0_i32_0 = arith.constant 0 : i32
    return %arg0, %c0_i32 : i32, i32
  }
  func.func @transform_1(%arg0: i32) -> (i32, i32) {
    %c0_i32 = arith.constant 0 : i32
    %c0_i32_0 = arith.constant 0 : i32
    %c0_i32_1 = arith.constant 0 : i32
    return %c0_i32, %c0_i32_0 : i32, i32
  }
  func.func @transform_2(%arg0: i32) -> (i32, i32) {
    %c0_i32 = arith.constant 0 : i32
    %c0_i32_0 = arith.constant 0 : i32
    %c0_i32_1 = arith.constant 0 : i32
    return %c0_i32, %c0_i32_0 : i32, i32
  }
  func.func @transform_3(%arg0: i32) -> (i32, i32) {
    %c0_i32 = arith.constant 0 : i32
    %c0_i32_0 = arith.constant 0 : i32
    %c0_i32_1 = arith.constant 0 : i32
    return %c0_i32, %c0_i32_0 : i32, i32
  }
  func.func @transform_4(%arg0: i32) -> (i32, i32) {
    %c0_i32 = arith.constant 0 : i32
    %c0_i32_0 = arith.constant 0 : i32
    return %arg0, %c0_i32 : i32, i32
  }
}

</mosaic_0001>

<bundles_post_ra>
// kernel: tpu_custom_call.1
= control target key start
LH: loop header
LB: loop body
LE: loop exit
PB: predicated region body
PF: predicated region fallthrough
CT: control target
= control target key end

     0   :  { %9 = vsyncpa [#allocation3], 0  ;;  %s578_s0 = inlined_call_operand.hbm [shape: f32[8,128], index: 0, kind: input, shape index: {}]   ;;  %s579_s1 = inlined_call_operand.hbm [shape: f32[128,256], index: 1, kind: input, shape index: {}]   ;;  %s580_s2 = inlined_call_operand.hbm [shape: f32[256,256], index: 2, kind: input, shape index: {}]   ;;  %s581_s3 = inlined_call_operand.hbm [shape: f32[256,128], index: 3, kind: input, shape index: {}]   ;;  %s582_s4 = inlined_call_operand.hbm [shape: f32[8,128], index: 4, kind: output, shape index: {}]  }
   0x1   :  { %10 = vsyncpa [#allocation6], 0 }
   0x2   :  { %11 = vsyncpa [#allocation9], 0  ;;  %s28_s17 = sshll.u32 %s579_s1, 4  ;;  %s29_s17 = int_to_ptr.hbm [resolvable:$true] %s28_s17 }
   0x3   :  { %12 = vsyncpa [#allocation4], 0  ;;  %s529_s18 = smov [#allocation5]   ;;  %s18_s22 = sshll.u32 %s578_s0, 4  ;;  %s19_s22 = int_to_ptr.hbm [resolvable:$true] %s18_s22 }
   0x4   :  { %s30_s19 = sshll.u32 %s529_s18, 4  ;;  %s530_s23 = smov 256   ;;  %s31_s19 = int_to_ptr.vmem [resolvable:$true] %s30_s19 }
   0x5   :  { %s531_s24 = smov 16   ;;  %s532_s25 = smov [#allocation2]  }
   0x6   :  { %36 = dma.hbm_to_vmem [thread:$0]  %s29_s17, 4096, %s31_s19, [#allocation6], %s530_s23, %s530_s23, %s531_s24  }
   0x7   :  { %s20_s26 = sshll.u32 %s532_s25, 4  ;;  %s41_s29 = sshll.u32 %s580_s2, 4  ;;  %s21_s26 = int_to_ptr.vmem [resolvable:$true] %s20_s26  ;;  %s42_s29 = int_to_ptr.hbm [resolvable:$true] %s41_s29 }
   0x8   :  { %23 = dma.hbm_to_vmem [thread:$0]  %s19_s22, 128, %s21_s26, [#allocation3]  }
   0x9   :  { %s54_s5 = sshll.u32 %s581_s3, 4  ;;  %s533_s6 = smov [#allocation7]   ;;  %s55_s5 = int_to_ptr.hbm [resolvable:$true] %s54_s5 }
   0xa   :  { %s43_s7 = sshll.u32 %s533_s6, 4  ;;  %s534_s0 = smov [#allocation8]   ;;  %s44_s7 = int_to_ptr.vmem [resolvable:$true] %s43_s7 }
   0xb   :  { %49 = dma.hbm_to_vmem [thread:$0]  %s42_s29, 8192, %s44_s7, [#allocation6], %s530_s23, %s530_s23, %s531_s24  }
   0xc   :  { %s56_s8 = sshll.u32 %s534_s0, 4  ;;  %s535_s9 = smov 128   ;;  %s57_s8 = int_to_ptr.vmem [resolvable:$true] %s56_s8 }
   0xd   :  { %s536_s10 = smov 8  }
   0xe   :  { %62 = dma.hbm_to_vmem [thread:$0]  %s55_s5, 4096, %s57_s8, [#allocation9], %s535_s9, %s535_s9, %s536_s10  }
   0xf   :  { %521 = dma.done.wait [#allocation3], 128  }
  0x10   :  { %522 = vsyncadd [#allocation3], 4294967168 }
  0x11   :  { %523 = dma.done.wait [#allocation6], 12288  }
  0x12   :  { %524 = vsyncadd [#allocation6], 4294955008 }
  0x13   :  { %525 = dma.done.wait [#allocation9], 4096  }
  0x14   :  { %526 = vsyncadd [#allocation9], 4294963200  ;;  %v110_v0 = vld [vmem:[#allocation5 + $0xf0] sm:$0xff]  ;;  %v111_v1 = vld [vmem:[#allocation5 + $0xf8] sm:$0xff]  ;;  %s537_s2 = smov [#allocation10]   ;;  %s380_s13 = sshll.u32 %s582_s4, 4  ;;  %s381_s13 = int_to_ptr.hbm [resolvable:$true] %s380_s13 }
  0x15   :  { %v108_v2 = vld [vmem:[#allocation5 + $0xe0] sm:$0xff]  ;;  %112 = vmatpush.msra.mxu0 %v110_v0  ;;  %132 = vmatpush.msra.mxu1 %v111_v1  ;;  %v109_v3 = vld [vmem:[#allocation5 + $0xe8] sm:$0xff]  ;;  %v106_v4 = vld [vmem:[#allocation5 + $0xd0] sm:$0xff]  ;;  %s378_s3 = sshll.u32 %s537_s2, 4  ;;  %s379_s3 = int_to_ptr.vmem [resolvable:$true] %s378_s3 }
  0x16   :  { %v107_v5 = vld [vmem:[#allocation5 + $0xd8] sm:$0xff]  ;;  %v104_v6 = vld [vmem:[#allocation5 + $0xc0] sm:$0xff]  ;;  %v105_v7 = vld [vmem:[#allocation5 + $0xc8] sm:$0xff] }
  0x17   :  { %113 = vmatpush.msra.mxu0 %v108_v2  ;;  %133 = vmatpush.msra.mxu1 %v109_v3  ;;  %v102_v8 = vld [vmem:[#allocation5 + $0xb0] sm:$0xff]  ;;  %v103_v9 = vld [vmem:[#allocation5 + $0xb8] sm:$0xff]  ;;  %v100_v10 = vld [vmem:[#allocation5 + $0xa0] sm:$0xff] }
  0x18   :  { %v101_v11 = vld [vmem:[#allocation5 + $0xa8] sm:$0xff]  ;;  %v98_v12 = vld [vmem:[#allocation5 + $0x90] sm:$0xff]  ;;  %v99_v13 = vld [vmem:[#allocation5 + $0x98] sm:$0xff] }
  0x19   :  { %114 = vmatpush.msra.mxu0 %v106_v4  ;;  %134 = vmatpush.msra.mxu1 %v107_v5  ;;  %v96_v14 = vld [vmem:[#allocation5 + $0x80] sm:$0xff]  ;;  %v184_v15 = vld [vmem:[#allocation7 + $0xf0] sm:$0xff]  ;;  %v97_v17 = vld [vmem:[#allocation5 + $0x88] sm:$0xff] }
  0x1a   :  { %v216_v16 = vld [vmem:[#allocation7 + $0x1f0] sm:$0xff]  ;;  %218 = vmatpush.msra.mxu2 %v184_v15  ;;  %v182_v18 = vld [vmem:[#allocation7 + $0xe0] sm:$0xff]  ;;  %v95_v22 = vld [vmem:[#allocation5 + $0x78] sm:$0xff] }
  0x1b   :  { %115 = vmatpush.msra.mxu0 %v104_v6  ;;  %135 = vmatpush.msra.mxu1 %v105_v7  ;;  %v214_v19 = vld [vmem:[#allocation7 + $0x1e0] sm:$0xff]  ;;  %v180_v20 = vld [vmem:[#allocation7 + $0xd0] sm:$0xff]  ;;  %v93_v27 = vld [vmem:[#allocation5 + $0x68] sm:$0xff] }
  0x1c   :  { %238 = vmatpush.msra.mxu3 %v216_v16  ;;  %v94_v21 = vld [vmem:[#allocation5 + $0x70] sm:$0xff]  ;;  %219 = vmatpush.msra.mxu2 %v182_v18  ;;  %v178_v24 = vld [vmem:[#allocation7 + $0xc0] sm:$0xff]  ;;  %v91_v31 = vld [vmem:[#allocation5 + $0x58] sm:$0xff] }
  0x1d   :  { %116 = vmatpush.msra.mxu0 %v102_v8  ;;  %136 = vmatpush.msra.mxu1 %v103_v9  ;;  %v212_v23 = vld [vmem:[#allocation7 + $0x1d0] sm:$0xff]  ;;  %v210_v25 = vld [vmem:[#allocation7 + $0x1c0] sm:$0xff]  ;;  %v89_v35 = vld [vmem:[#allocation5 + $0x48] sm:$0xff] }
  0x1e   :  { %239 = vmatpush.msra.mxu3 %v214_v19  ;;  %v92_v26 = vld [vmem:[#allocation5 + $0x60] sm:$0xff]  ;;  %220 = vmatpush.msra.mxu2 %v180_v20  ;;  %v176_v28 = vld [vmem:[#allocation7 + $0xb0] sm:$0xff]  ;;  %v87_v39 = vld [vmem:[#allocation5 + $0x38] sm:$0xff] }
  0x1f   :  { %117 = vmatpush.msra.mxu0 %v100_v10  ;;  %137 = vmatpush.msra.mxu1 %v101_v11  ;;  %v208_v29 = vld [vmem:[#allocation7 + $0x1b0] sm:$0xff]  ;;  %v174_v32 = vld [vmem:[#allocation7 + $0xa0] sm:$0xff]  ;;  %v85_v43 = vld [vmem:[#allocation5 + $0x28] sm:$0xff] }
  0x20   :  { %240 = vmatpush.msra.mxu3 %v212_v23  ;;  %v90_v30 = vld [vmem:[#allocation5 + $0x50] sm:$0xff]  ;;  %221 = vmatpush.msra.mxu2 %v178_v24  ;;  %v206_v33 = vld [vmem:[#allocation7 + $0x1a0] sm:$0xff]  ;;  %v83_v47 = vld [vmem:[#allocation5 + $0x18] sm:$0xff] }
  0x21   :  { %118 = vmatpush.msra.mxu0 %v98_v12  ;;  %138 = vmatpush.msra.mxu1 %v99_v13  ;;  %v88_v34 = vld [vmem:[#allocation5 + $0x40] sm:$0xff]  ;;  %v172_v36 = vld [vmem:[#allocation7 + $0x90] sm:$0xff]  ;;  %v81_v51 = vld [vmem:[#allocation5 + $0x8] sm:$0xff] }
  0x22   :  { %241 = vmatpush.msra.mxu3 %v210_v25  ;;  %222 = vmatpush.msra.mxu2 %v176_v28  ;;  %v204_v37 = vld [vmem:[#allocation7 + $0x190] sm:$0xff]  ;;  %v170_v40 = vld [vmem:[#allocation7 + $0x80] sm:$0xff]  ;;  %v79_v52 = vld [vmem:[#allocation2] sm:$0xff] }
  0x23   :  { %119 = vmatpush.msra.mxu0 %v96_v14  ;;  %139 = vmatpush.msra.mxu1 %v97_v17  ;;  %v86_v38 = vld [vmem:[#allocation5 + $0x30] sm:$0xff]  ;;  %v202_v41 = vld [vmem:[#allocation7 + $0x180] sm:$0xff]  ;;  %v185_v53 = vld [vmem:[#allocation7 + $0xf8] sm:$0xff] }
  0x24   :  { %242 = vmatpush.msra.mxu3 %v208_v29  ;;  %223 = vmatpush.msra.mxu2 %v174_v32  ;;  %v84_v42 = vld [vmem:[#allocation5 + $0x20] sm:$0xff]  ;;  %v168_v44 = vld [vmem:[#allocation7 + $0x70] sm:$0xff]  ;;  %v217_v54 = vld [vmem:[#allocation7 + $0x1f8] sm:$0xff] }
  0x25   :  { %120 = vmatpush.msra.mxu0 %v94_v21  ;;  %140 = vmatpush.msra.mxu1 %v95_v22  ;;  %v200_v45 = vld [vmem:[#allocation7 + $0x170] sm:$0xff]  ;;  %v166_v48 = vld [vmem:[#allocation7 + $0x60] sm:$0xff]  ;;  %v183_v57 = vld [vmem:[#allocation7 + $0xe8] sm:$0xff] }
  0x26   :  { %243 = vmatpush.msra.mxu3 %v206_v33  ;;  %224 = vmatpush.msra.mxu2 %v172_v36  ;;  %v82_v46 = vld [vmem:[#allocation5 + $0x10] sm:$0xff]  ;;  %v198_v49 = vld [vmem:[#allocation7 + $0x160] sm:$0xff]  ;;  %v215_v58 = vld [vmem:[#allocation7 + $0x1e8] sm:$0xff] }
  0x27   :  { %121 = vmatpush.msra.mxu0 %v92_v26  ;;  %141 = vmatpush.msra.mxu1 %v93_v27  ;;  %v80_v50 = vld [vmem:[#allocation5] sm:$0xff]  ;;  %v164_v55 = vld [vmem:[#allocation7 + $0x50] sm:$0xff]  ;;  %v181_v61 = vld [vmem:[#allocation7 + $0xd8] sm:$0xff] }
  0x28   :  { %244 = vmatpush.msra.mxu3 %v204_v37  ;;  %225 = vmatpush.msra.mxu2 %v170_v40  ;;  %v196_v56 = vld [vmem:[#allocation7 + $0x150] sm:$0xff]  ;;  %v162_v59 = vld [vmem:[#allocation7 + $0x40] sm:$0xff]  ;;  %v213_v62 = vld [vmem:[#allocation7 + $0x1d8] sm:$0xff] }
  0x29   :  { %122 = vmatpush.msra.mxu0 %v90_v30  ;;  %142 = vmatpush.msra.mxu1 %v91_v31  ;;  %v194_v60 = vld [vmem:[#allocation7 + $0x140] sm:$0xff]  ;;  %v160_v63 = vld [vmem:[#allocation7 + $0x30] sm:$0xff]  ;;  %v179_v1 = vld [vmem:[#allocation7 + $0xc8] sm:$0xff] }
  0x2a   :  { %245 = vmatpush.msra.mxu3 %v202_v41  ;;  %226 = vmatpush.msra.mxu2 %v168_v44  ;;  %v192_v0 = vld [vmem:[#allocation7 + $0x130] sm:$0xff]  ;;  %v211_v2 = vld [vmem:[#allocation7 + $0x1c8] sm:$0xff]  ;;  %v158_v3 = vld [vmem:[#allocation7 + $0x20] sm:$0xff] }
  0x2b   :  { %123 = vmatpush.msra.mxu0 %v88_v34  ;;  %143 = vmatpush.msra.mxu1 %v89_v35  ;;  %v190_v4 = vld [vmem:[#allocation7 + $0x120] sm:$0xff]  ;;  %v177_v5 = vld [vmem:[#allocation7 + $0xb8] sm:$0xff]  ;;  %v175_v7 = vld [vmem:[#allocation7 + $0xa8] sm:$0xff] }
  0x2c   :  { %246 = vmatpush.msra.mxu3 %v200_v45  ;;  %227 = vmatpush.msra.mxu2 %v166_v48  ;;  %v209_v6 = vld [vmem:[#allocation7 + $0x1b8] sm:$0xff]  ;;  %v207_v8 = vld [vmem:[#allocation7 + $0x1a8] sm:$0xff]  ;;  %v156_v25 = vld [vmem:[#allocation7 + $0x10] sm:$0xff] }
  0x2d   :  { %124 = vmatpush.msra.mxu0 %v86_v38  ;;  %144 = vmatpush.msra.mxu1 %v87_v39  ;;  %v173_v9 = vld [vmem:[#allocation7 + $0x98] sm:$0xff]  ;;  %v171_v11 = vld [vmem:[#allocation7 + $0x88] sm:$0xff]  ;;  %v188_v26 = vld [vmem:[#allocation7 + $0x110] sm:$0xff] }
  0x2e   :  { %247 = vmatpush.msra.mxu3 %v198_v49  ;;  %228 = vmatpush.msra.mxu2 %v164_v55  ;;  %v205_v10 = vld [vmem:[#allocation7 + $0x198] sm:$0xff]  ;;  %v203_v12 = vld [vmem:[#allocation7 + $0x188] sm:$0xff]  ;;  %v154_v29 = vld [vmem:[#allocation7] sm:$0xff] }
  0x2f   :  { %125 = vmatpush.msra.mxu0 %v84_v42  ;;  %145 = vmatpush.msra.mxu1 %v85_v43  ;;  %v169_v13 = vld [vmem:[#allocation7 + $0x78] sm:$0xff]  ;;  %v167_v15 = vld [vmem:[#allocation7 + $0x68] sm:$0xff]  ;;  %v186_v30 = vld [vmem:[#allocation7 + $0x100] sm:$0xff] }
  0x30   :  { %248 = vmatpush.msra.mxu3 %v196_v56  ;;  %229 = vmatpush.msra.mxu2 %v162_v59  ;;  %v201_v14 = vld [vmem:[#allocation7 + $0x178] sm:$0xff]  ;;  %v199_v16 = vld [vmem:[#allocation7 + $0x168] sm:$0xff]  ;;  %v330_v34 = vld [vmem:[#allocation8 + $0xf0] sm:$0xff] }
  0x31   :  { %126 = vmatpush.msra.mxu0 %v82_v46  ;;  %146 = vmatpush.msra.mxu1 %v83_v47  ;;  %v165_v17 = vld [vmem:[#allocation7 + $0x58] sm:$0xff]  ;;  %v163_v19 = vld [vmem:[#allocation7 + $0x48] sm:$0xff]  ;;  %v314_v36 = vld [vmem:[#allocation8 + $0x70] sm:$0xff] }
  0x32   :  { %249 = vmatpush.msra.mxu3 %v194_v60  ;;  %230 = vmatpush.msra.mxu2 %v160_v63  ;;  %v197_v18 = vld [vmem:[#allocation7 + $0x158] sm:$0xff]  ;;  %v195_v20 = vld [vmem:[#allocation7 + $0x148] sm:$0xff]  ;;  %v328_v39 = vld [vmem:[#allocation8 + $0xe0] sm:$0xff] }
  0x33   :  { %127 = vmatpush.msra.mxu0 %v80_v50  ;;  %147 = vmatpush.msra.mxu1 %v81_v51  ;;  %v161_v21 = vld [vmem:[#allocation7 + $0x38] sm:$0xff]  ;;  %v159_v23 = vld [vmem:[#allocation7 + $0x28] sm:$0xff]  ;;  %v312_v40 = vld [vmem:[#allocation8 + $0x60] sm:$0xff] }
  0x34   :  { %128 = vmatmul.f32.vlgmr.msra.gmra.mxu0 %v79_v52  ;;  %148 = vmatmul.f32.vlgmr.msra.gmra.mxu1 %v79_v52  ;;  %v193_v22 = vld [vmem:[#allocation7 + $0x138] sm:$0xff]  ;;  %v191_v24 = vld [vmem:[#allocation7 + $0x128] sm:$0xff]  ;;  %v326_v43 = vld [vmem:[#allocation8 + $0xd0] sm:$0xff] }
  0x35   :  { %258 = vmatpush.msrb.mxu0 %v185_v53  ;;  %278 = vmatpush.msrb.mxu1 %v217_v54  ;;  %v157_v27 = vld [vmem:[#allocation7 + $0x18] sm:$0xff]  ;;  %v155_v31 = vld [vmem:[#allocation7 + $0x8] sm:$0xff]  ;;  %v310_v44 = vld [vmem:[#allocation8 + $0x50] sm:$0xff] }
  0x36   :  { %250 = vmatpush.msra.mxu3 %v192_v0  ;;  %231 = vmatpush.msra.mxu2 %v158_v3  ;;  %v189_v28 = vld [vmem:[#allocation7 + $0x118] sm:$0xff]  ;;  %v187_v32 = vld [vmem:[#allocation7 + $0x108] sm:$0xff]  ;;  %v324_v47 = vld [vmem:[#allocation8 + $0xc0] sm:$0xff] }
  0x37   :  { %259 = vmatpush.msrb.mxu0 %v183_v57  ;;  %279 = vmatpush.msrb.mxu1 %v215_v58  ;;  %v331_v33 = vld [vmem:[#allocation8 + $0xf8] sm:$0xff]  ;;  %v329_v37 = vld [vmem:[#allocation8 + $0xe8] sm:$0xff]  ;;  %v308_v48 = vld [vmem:[#allocation8 + $0x40] sm:$0xff] }
  0x38   :  { %251 = vmatpush.msra.mxu3 %v190_v4  ;;  %232 = vmatpush.msra.mxu2 %v156_v25  ;;  %v315_v35 = vld [vmem:[#allocation8 + $0x78] sm:$0xff]  ;;  %v313_v38 = vld [vmem:[#allocation8 + $0x68] sm:$0xff]  ;;  %v322_v51 = vld [vmem:[#allocation8 + $0xb0] sm:$0xff] }
  0x39   :  { %260 = vmatpush.msrb.mxu0 %v181_v61  ;;  %280 = vmatpush.msrb.mxu1 %v213_v62  ;;  %v327_v41 = vld [vmem:[#allocation8 + $0xd8] sm:$0xff]  ;;  %v325_v45 = vld [vmem:[#allocation8 + $0xc8] sm:$0xff]  ;;  %v306_v52 = vld [vmem:[#allocation8 + $0x30] sm:$0xff] }
  0x3a   :  { %252 = vmatpush.msra.mxu3 %v188_v26  ;;  %233 = vmatpush.msra.mxu2 %v154_v29  ;;  %v311_v42 = vld [vmem:[#allocation8 + $0x58] sm:$0xff]  ;;  %v309_v46 = vld [vmem:[#allocation8 + $0x48] sm:$0xff]  ;;  %v320_v54 = vld [vmem:[#allocation8 + $0xa0] sm:$0xff] }
  0x3b   :  { %261 = vmatpush.msrb.mxu0 %v179_v1  ;;  %281 = vmatpush.msrb.mxu1 %v211_v2  ;;  %v323_v49 = vld [vmem:[#allocation8 + $0xb8] sm:$0xff]  ;;  %v321_v53 = vld [vmem:[#allocation8 + $0xa8] sm:$0xff]  ;;  %v318_v61 = vld [vmem:[#allocation8 + $0x90] sm:$0xff] }
  0x3c   :  { %253 = vmatpush.msra.mxu3 %v186_v30  ;;  %332 = vmatpush.msrb.mxu2 %v315_v35  ;;  %v307_v50 = vld [vmem:[#allocation8 + $0x38] sm:$0xff]  ;;  %v305_v60 = vld [vmem:[#allocation8 + $0x28] sm:$0xff]  ;;  %v304_v62 = vld [vmem:[#allocation8 + $0x20] sm:$0xff] }
  0x3d   :  { %262 = vmatpush.msrb.mxu0 %v177_v5  ;;  %282 = vmatpush.msrb.mxu1 %v209_v6  ;;  %v319_v55 = vld [vmem:[#allocation8 + $0x98] sm:$0xff]  ;;  %v317_v63 = vld [vmem:[#allocation8 + $0x88] sm:$0xff]  ;;  %v316_v1 = vld [vmem:[#allocation8 + $0x80] sm:$0xff] }
  0x3e   :  { %352 = vmatpush.msrb.mxu3 %v331_v33  ;;  %333 = vmatpush.msrb.mxu2 %v314_v36  ;;  %v303_v0 = vld [vmem:[#allocation8 + $0x18] sm:$0xff]  ;;  %v302_v2 = vld [vmem:[#allocation8 + $0x10] sm:$0xff]  ;;  %v301_v3 = vld [vmem:[#allocation8 + $0x8] sm:$0xff] }
  0x3f   :  { %263 = vmatpush.msrb.mxu0 %v175_v7  ;;  %283 = vmatpush.msrb.mxu1 %v207_v8  ;;  %v300_v4 = vld [vmem:[#allocation8] sm:$0xff] }
  0x40   :  { %353 = vmatpush.msrb.mxu3 %v330_v34  ;;  %334 = vmatpush.msrb.mxu2 %v313_v38 }
  0x41   :  { %264 = vmatpush.msrb.mxu0 %v173_v9  ;;  %284 = vmatpush.msrb.mxu1 %v205_v10 }
  0x42   :  { %354 = vmatpush.msrb.mxu3 %v329_v37  ;;  %335 = vmatpush.msrb.mxu2 %v312_v40 }
  0x43   :  { %265 = vmatpush.msrb.mxu0 %v171_v11  ;;  %285 = vmatpush.msrb.mxu1 %v203_v12 }
  0x44   :  { %355 = vmatpush.msrb.mxu3 %v328_v39  ;;  %336 = vmatpush.msrb.mxu2 %v311_v42 }
  0x45   :  { %266 = vmatpush.msrb.mxu0 %v169_v13  ;;  %286 = vmatpush.msrb.mxu1 %v201_v14 }
  0x46   :  { %356 = vmatpush.msrb.mxu3 %v327_v41  ;;  %337 = vmatpush.msrb.mxu2 %v310_v44 }
  0x47   :  { %267 = vmatpush.msrb.mxu0 %v167_v15  ;;  %287 = vmatpush.msrb.mxu1 %v199_v16 }
  0x48   :  { %357 = vmatpush.msrb.mxu3 %v326_v43  ;;  %338 = vmatpush.msrb.mxu2 %v309_v46 }
  0x49   :  { %268 = vmatpush.msrb.mxu0 %v165_v17  ;;  %288 = vmatpush.msrb.mxu1 %v197_v18 }
  0x4a   :  { %358 = vmatpush.msrb.mxu3 %v325_v45  ;;  %339 = vmatpush.msrb.mxu2 %v308_v48 }
  0x4b   :  { %269 = vmatpush.msrb.mxu0 %v163_v19  ;;  %289 = vmatpush.msrb.mxu1 %v195_v20 }
  0x4c   :  { %359 = vmatpush.msrb.mxu3 %v324_v47  ;;  %340 = vmatpush.msrb.mxu2 %v307_v50 }
  0x4d   :  { %270 = vmatpush.msrb.mxu0 %v161_v21  ;;  %290 = vmatpush.msrb.mxu1 %v193_v22 }
  0x4e   :  { %360 = vmatpush.msrb.mxu3 %v323_v49  ;;  %341 = vmatpush.msrb.mxu2 %v306_v52 }
  0x4f   :  { %271 = vmatpush.msrb.mxu0 %v159_v23  ;;  %291 = vmatpush.msrb.mxu1 %v191_v24 }
  0x50   :  { %361 = vmatpush.msrb.mxu3 %v322_v51  ;;  %342 = vmatpush.msrb.mxu2 %v305_v60 }
  0x51   :  { %272 = vmatpush.msrb.mxu0 %v157_v27  ;;  %292 = vmatpush.msrb.mxu1 %v189_v28 }
  0x52   :  { %362 = vmatpush.msrb.mxu3 %v321_v53  ;;  %343 = vmatpush.msrb.mxu2 %v304_v62 }
  0x53   :  { %273 = vmatpush.msrb.mxu0 %v155_v31  ;;  %293 = vmatpush.msrb.mxu1 %v187_v32 }
  0x54   :  { %363 = vmatpush.msrb.mxu3 %v320_v54  ;;  %344 = vmatpush.msrb.mxu2 %v303_v0 }
  0x56   :  { %364 = vmatpush.msrb.mxu3 %v319_v55  ;;  %345 = vmatpush.msrb.mxu2 %v302_v2 }
  0x58   :  { %365 = vmatpush.msrb.mxu3 %v318_v61  ;;  %346 = vmatpush.msrb.mxu2 %v301_v3 }
  0x5a   :  { %366 = vmatpush.msrb.mxu3 %v317_v63  ;;  %347 = vmatpush.msrb.mxu2 %v300_v4 }
  0x5c   :  { %367 = vmatpush.msrb.mxu3 %v316_v1 }
  0xb1   :  { %v129_v56 = vpop.f32.mrf.mxu0  ;;  %v149_v57 = vpop.f32.mrf.mxu1 }
  0xb2   :  { %v152_v58 = vmax.f32 %v129_v56, 0.0  ;;  %v153_v59 = vmax.f32 %v149_v57, 0.0 }
  0xb4   :  { %234 = vmatmul.f32.vlgmr.msra.gmra.mxu2 %v152_v58  ;;  %254 = vmatmul.f32.vlgmr.msra.gmra.mxu3 %v153_v59 }
  0xb5   :  { %274 = vmatmul.f32.vlgmr.msrb.gmra.mxu0 %v152_v58  ;;  %294 = vmatmul.f32.vlgmr.msrb.gmra.mxu1 %v153_v59 }
 0x132   :  { %v275_v5 = vpop.f32.mrf.mxu0  ;;  %v295_v6 = vpop.f32.mrf.mxu1 }
 0x133   :  { %v296_v7 = vadd.f32 %v295_v6, %v275_v5 }
 0x135   :  { %v299_v8 = vmax.f32 %v296_v7, 0.0 }
 0x137   :  { %368 = vmatmul.f32.vlgmr.msrb.gmra.mxu3 %v299_v8  ;;  %v235_v9 = vpop.f32.mrf.mxu2  ;;  %v255_v10 = vpop.f32.mrf.mxu3 }
 0x138   :  { %v256_v11 = vadd.f32 %v255_v10, %v235_v9 }
 0x13a   :  { %v298_v12 = vmax.f32 %v256_v11, 0.0 }
 0x13c   :  { %348 = vmatmul.f32.vlgmr.msrb.gmra.mxu2 %v298_v12 }
 0x1ba   :  { %v369_v13 = vpop.f32.mrf.mxu3 }
 0x1bf   :  { %v349_v14 = vpop.f32.mrf.mxu2 }
 0x1c0   :  { %v370_v15 = vadd.f32 %v369_v13, %v349_v14 }
 0x1c2   :  { %372 = vst [vmem:[#allocation10] sm:$0xff] %v370_v15 }
 0x1c3   :  { %383 = dma.vmem_to_hbm [thread:$0]  %s379_s3, 128, %s381_s13, [#allocation4]  }
 0x1c4   :  { %527 = dma.done.wait [#allocation4], 128  }
 0x1c5   :  { %528 = vsyncadd [#allocation4], 4294967168 }
 0x1c6   :  { %388 = vsyncpa [#allocation3], 1 }
 0x1c7   :  { %389 = vsyncpa [#allocation6], 1 }
 0x1c8   :  { %390 = vsyncpa [#allocation9], 1 }
 0x1c9   :  { %391 = vsyncpa [#allocation4], 1 }

</bundles_post_ra>
